<compile_context>
chip_gen: v7x
topology: tpu7x:2x2x1
jax: 0.10.0
libtpu: 0.0.40
codegen_flags: <defaults>
</compile_context>

<pallas_src>
import jax
import jax.numpy as jnp
from jax.scipy.linalg import block_diag
from jax.experimental import pallas as pl
from jax.experimental.pallas import tpu as pltpu


# --------------------------------------------------------------------------- #
# Kernel: fused 3-layer MLP over the block-diagonal (all-discriminator) slabs.
# --------------------------------------------------------------------------- #
def _fused_disc_kernel(x_ref, w1_ref, b1_ref, w2_ref, b2_ref, w3_ref, b3_ref, o_ref):
    cdt = w1_ref.dtype  # compute dtype for MXU operands (bf16)
    x = x_ref[...]                                                  # (TB, sumD)
    h = jnp.dot(x, w1_ref[...], preferred_element_type=jnp.float32)
    h = jnp.maximum(h + b1_ref[...], 0.0)                           # f32 bias+ReLU
    h = jnp.dot(h.astype(cdt), w2_ref[...], preferred_element_type=jnp.float32)
    h = jnp.maximum(h + b2_ref[...], 0.0)
    h = jnp.dot(h.astype(cdt), w3_ref[...], preferred_element_type=jnp.float32)
    h = jnp.maximum(h + b3_ref[...], 0.0)                           # (TB, 128) lane-dense
    o_ref[...] = h.astype(o_ref.dtype)


# --------------------------------------------------------------------------- #
# Parameter construction (PyTorch nn.Linear layout) + fusion into block-diag.
# --------------------------------------------------------------------------- #
def init_discriminator_params(key, outputs_size, K=2):
    """Deterministic init matching nn.Linear shapes: W (out, in), b (1, out)."""
    dims = []
    d = outputs_size
    dims.append((d // K, d)); d = d // K                            # fc1
    dims.append((d // K, d)); d = d // K                            # fc2
    dims.append((2, d))                                             # fc3
    params = []
    for (out_d, in_d) in dims:
        key, kw, kb = jax.random.split(key, 3)
        bound = 1.0 / jnp.sqrt(jnp.float32(in_d))
        w = jax.random.uniform(kw, (out_d, in_d), jnp.float32, -bound, bound)
        b = jax.random.uniform(kb, (1, out_d), jnp.float32, -bound, bound)
        params.extend([w, b])
    return tuple(params)


def build_fused_params(per_disc_params, compute_dtype=jnp.bfloat16, lane_pad=128):
    """Pre-transpose + block-diagonalize all discriminator weights once.

    Returns (W1, b1, W2, b2, W3, b3) with weights shaped (in, out) in
    `compute_dtype`, biases (1, out) in f32, and the last layer zero-padded
    along output lanes to a multiple of `lane_pad` (lane-dense store).
    """
    w1s, b1s, w2s, b2s, w3s, b3s = zip(*per_disc_params)
    W1 = block_diag(*[w.T for w in w1s])                            # (sumD,   sumD/2)
    W2 = block_diag(*[w.T for w in w2s])                            # (sumD/2, sumD/4)
    W3 = block_diag(*[w.T for w in w3s])                            # (sumD/4, 2*N)
    b1 = jnp.concatenate(b1s, axis=-1)
    b2 = jnp.concatenate(b2s, axis=-1)
    b3 = jnp.concatenate(b3s, axis=-1)
    out_cols = W3.shape[1]
    padded = ((out_cols + lane_pad - 1) // lane_pad) * lane_pad
    pad = padded - out_cols
    W3 = jnp.pad(W3, ((0, 0), (0, pad)))                            # extra lanes -> relu(0)=0
    b3 = jnp.pad(b3, ((0, 0), (0, pad)))
    return (W1.astype(compute_dtype), b1.astype(jnp.float32),
            W2.astype(compute_dtype), b2.astype(jnp.float32),
            W3.astype(compute_dtype), b3.astype(jnp.float32))


# --------------------------------------------------------------------------- #
# Forward: one pallas_call for all discriminators.
# --------------------------------------------------------------------------- #
def fused_discriminators_forward(xs, fused_params, num_disc, *, batch_block=512):
    """xs: list of (B, 1, D_i) f32.  Returns list of (B, 2) f32 outputs."""
    W1, b1, W2, b2, W3, b3 = fused_params
    B = xs[0].shape[0]
    x_cat = jnp.concatenate([x.reshape(B, -1) for x in xs], axis=-1)
    x_cat = x_cat.astype(W1.dtype)                                  # bf16 matmul input
    D = x_cat.shape[1]
    Hout = W3.shape[1]                                              # lane-padded (mult of 128)

    tb = batch_block if (B > batch_block and B % batch_block == 0) else B
    grid = (B // tb,)

    def _resident(a):  # weights/biases: same block every grid step -> stay in VMEM
        return pl.BlockSpec(a.shape, lambda i, _nd=a.ndim: (0,) * _nd)

    out = pl.pallas_call(
        _fused_disc_kernel,
        out_shape=jax.ShapeDtypeStruct((B, Hout), jnp.float32),
        grid=grid,
        in_specs=[
            pl.BlockSpec((tb, D), lambda i: (i, 0)),                # x streams over batch
            _resident(W1), _resident(b1),
            _resident(W2), _resident(b2),
            _resident(W3), _resident(b3),
        ],
        out_specs=pl.BlockSpec((tb, Hout), lambda i: (i, 0)),
        compiler_params=pltpu.CompilerParams(
            dimension_semantics=("parallel",)),                     # batch tiles across TCs (v7x)
    )(x_cat, W1, b1, W2, b2, W3, b3)

    # slice the lane-dense slab back into per-discriminator (B, 2) outputs
    return [out[:, 2 * i:2 * (i + 1)] for i in range(num_disc)]


# --------------------------------------------------------------------------- #
# Pure-JAX reference mirroring the PyTorch forward (f32).
# --------------------------------------------------------------------------- #
def _reference_forward(x, params):
    w1, b1, w2, b2, w3, b3 = params
    x5 = x[:, :, None, None]                                        # (B, 1, 1, 1, D)
    h = jax.nn.relu(jnp.einsum("...d,od->...o", x5, w1) + b1[0])
    h = jax.nn.relu(jnp.einsum("...d,od->...o", h, w2) + b2[0])
    h = jax.nn.relu(jnp.einsum("...d,od->...o", h, w3) + b3[0])
    return h.reshape(h.shape[0], -1)                                # (B, 2)


if __name__ == "__main__":
    output_dims = [64, 32, 16]
    num_disc = len(output_dims)

    key = jax.random.PRNGKey(0)
    key_x, key_p = jax.random.split(key)

    all_params = []
    for d in output_dims:
        key_p, kp = jax.random.split(key_p)
        all_params.append(init_discriminator_params(kp, d))

    fused = build_fused_params(all_params, compute_dtype=jnp.bfloat16)

    # Small-batch run (single block) and a larger batch exercising the batch grid.
    for batch, batch_block in ((8, 512), (1024, 256)):
        xs = []
        for d in output_dims:
            key_x, kx = jax.random.split(key_x)
            xs.append(jax.random.normal(kx, (batch, 1, d), jnp.float32))

        outs = fused_discriminators_forward(xs, fused, num_disc, batch_block=batch_block)
        outs = jax.block_until_ready(outs)

        # correctness check vs. f32 PyTorch-faithful reference
        # (loose tolerance accounts for bf16 matmul inputs; accumulation is f32)
        for x, p, o in zip(xs, all_params, outs):
            ref = _reference_forward(x, p)
            assert o.shape == (batch, 2), o.shape
            assert jnp.allclose(o, ref, atol=5e-2, rtol=5e-2), (
                float(jnp.max(jnp.abs(o - ref))))

    print("KERNEL_OK")
</pallas_src>

<mosaic_0001>
module attributes {stable_mosaic.version = 11 : i64} {
  func.func @_fused_disc_kernel(%arg0: i32, %arg1: memref<8x112xbf16, #tpu.memory_space<vmem>>, %arg2: memref<112x56xbf16, #tpu.memory_space<vmem>>, %arg3: memref<1x56xf32, #tpu.memory_space<vmem>>, %arg4: memref<56x28xbf16, #tpu.memory_space<vmem>>, %arg5: memref<1x28xf32, #tpu.memory_space<vmem>>, %arg6: memref<28x128xbf16, #tpu.memory_space<vmem>>, %arg7: memref<1x128xf32, #tpu.memory_space<vmem>>, %arg8: memref<8x128xf32, #tpu.memory_space<vmem>>) attributes {dimension_semantics = [#tpu.dimension_semantics<parallel>], iteration_bounds = array<i64: 1>, scalar_prefetch = 0 : i64, scratch_operands = 0 : i64, tpu.core_type = #tpu.core_type<tc>, window_params = [{transform_indices = @transform_0, window_bounds = array<i64: 8, 112>}, {pipeline_mode = #tpu.pipeline_mode<synchronous>, transform_indices = @transform_1, window_bounds = array<i64: 112, 56>}, {pipeline_mode = #tpu.pipeline_mode<synchronous>, transform_indices = @transform_2, window_bounds = array<i64: 1, 56>}, {pipeline_mode = #tpu.pipeline_mode<synchronous>, transform_indices = @transform_3, window_bounds = array<i64: 56, 28>}, {pipeline_mode = #tpu.pipeline_mode<synchronous>, transform_indices = @transform_4, window_bounds = array<i64: 1, 28>}, {pipeline_mode = #tpu.pipeline_mode<synchronous>, transform_indices = @transform_5, window_bounds = array<i64: 28, 128>}, {pipeline_mode = #tpu.pipeline_mode<synchronous>, transform_indices = @transform_6, window_bounds = array<i64: 1, 128>}, {transform_indices = @transform_7, window_bounds = array<i64: 8, 128>}]} {
    %c0 = arith.constant 0 : index
    %c0_0 = arith.constant 0 : index
    %0 = vector.load %arg1[%c0, %c0_0] : memref<8x112xbf16, #tpu.memory_space<vmem>>, vector<8x112xbf16>
    %c0_1 = arith.constant 0 : index
    %c0_2 = arith.constant 0 : index
    %1 = vector.load %arg2[%c0_1, %c0_2] : memref<112x56xbf16, #tpu.memory_space<vmem>>, vector<112x56xbf16>
    %cst = arith.constant dense<0.000000e+00> : vector<8x56xf32>
    %2 = tpu.matmul %0, %1, %cst {dimension_numbers = #tpu.dot_dimension_numbers<[1], [0], [0], [1], [0, 0, 1, 1], [], []>} : vector<8x112xbf16>, vector<112x56xbf16>, vector<8x56xf32> -> vector<8x56xf32>
    %c0_3 = arith.constant 0 : index
    %c0_4 = arith.constant 0 : index
    %3 = vector.load %arg3[%c0_3, %c0_4] : memref<1x56xf32, #tpu.memory_space<vmem>>, vector<1x56xf32>
    %4 = vector.broadcast %3 : vector<1x56xf32> to vector<8x56xf32>
    %5 = arith.addf %2, %4 : vector<8x56xf32>
    %cst_5 = arith.constant 0.000000e+00 : f32
    %6 = vector.broadcast %cst_5 : f32 to vector<8x56xf32>
    %7 = arith.maximumf %5, %6 : vector<8x56xf32>
    %8 = arith.truncf %7 : vector<8x56xf32> to vector<8x56xbf16>
    %c0_6 = arith.constant 0 : index
    %c0_7 = arith.constant 0 : index
    %9 = vector.load %arg4[%c0_6, %c0_7] : memref<56x28xbf16, #tpu.memory_space<vmem>>, vector<56x28xbf16>
    %cst_8 = arith.constant dense<0.000000e+00> : vector<8x28xf32>
    %10 = tpu.matmul %8, %9, %cst_8 {dimension_numbers = #tpu.dot_dimension_numbers<[1], [0], [0], [1], [0, 0, 1, 1], [], []>} : vector<8x56xbf16>, vector<56x28xbf16>, vector<8x28xf32> -> vector<8x28xf32>
    %c0_9 = arith.constant 0 : index
    %c0_10 = arith.constant 0 : index
    %11 = vector.load %arg5[%c0_9, %c0_10] : memref<1x28xf32, #tpu.memory_space<vmem>>, vector<1x28xf32>
    %12 = vector.broadcast %11 : vector<1x28xf32> to vector<8x28xf32>
    %13 = arith.addf %10, %12 : vector<8x28xf32>
    %cst_11 = arith.constant 0.000000e+00 : f32
    %14 = vector.broadcast %cst_11 : f32 to vector<8x28xf32>
    %15 = arith.maximumf %13, %14 : vector<8x28xf32>
    %16 = arith.truncf %15 : vector<8x28xf32> to vector<8x28xbf16>
    %c0_12 = arith.constant 0 : index
    %c0_13 = arith.constant 0 : index
    %17 = vector.load %arg6[%c0_12, %c0_13] : memref<28x128xbf16, #tpu.memory_space<vmem>>, vector<28x128xbf16>
    %cst_14 = arith.constant dense<0.000000e+00> : vector<8x128xf32>
    %18 = tpu.matmul %16, %17, %cst_14 {dimension_numbers = #tpu.dot_dimension_numbers<[1], [0], [0], [1], [0, 0, 1, 1], [], []>} : vector<8x28xbf16>, vector<28x128xbf16>, vector<8x128xf32> -> vector<8x128xf32>
    %c0_15 = arith.constant 0 : index
    %c0_16 = arith.constant 0 : index
    %19 = vector.load %arg7[%c0_15, %c0_16] : memref<1x128xf32, #tpu.memory_space<vmem>>, vector<1x128xf32>
    %20 = vector.broadcast %19 : vector<1x128xf32> to vector<8x128xf32>
    %21 = arith.addf %18, %20 : vector<8x128xf32>
    %cst_17 = arith.constant 0.000000e+00 : f32
    %22 = vector.broadcast %cst_17 : f32 to vector<8x128xf32>
    %23 = arith.maximumf %21, %22 : vector<8x128xf32>
    %c0_18 = arith.constant 0 : index
    %c0_19 = arith.constant 0 : index
    %24 = vector.load %arg8[%c0_18, %c0_19] : memref<8x128xf32, #tpu.memory_space<vmem>>, vector<8x128xf32>
    tpu.vector_store %arg8[%c0_18, %c0_19], %23 {strides = array<i32>} : memref<8x128xf32, #tpu.memory_space<vmem>>, vector<8x128xf32>,
    return
  }
  func.func @transform_0(%arg0: i32) -> (i32, i32) {
    %c0_i32 = arith.constant 0 : i32
    %c0_i32_0 = arith.constant 0 : i32
    return %arg0, %c0_i32 : i32, i32
  }
  func.func @transform_1(%arg0: i32) -> (i32, i32) {
    %c0_i32 = arith.constant 0 : i32
    %c0_i32_0 = arith.constant 0 : i32
    %c0_i32_1 = arith.constant 0 : i32
    return %c0_i32, %c0_i32_0 : i32, i32
  }
  func.func @transform_2(%arg0: i32) -> (i32, i32) {
    %c0_i32 = arith.constant 0 : i32
    %c0_i32_0 = arith.constant 0 : i32
    %c0_i32_1 = arith.constant 0 : i32
    return %c0_i32, %c0_i32_0 : i32, i32
  }
  func.func @transform_3(%arg0: i32) -> (i32, i32) {
    %c0_i32 = arith.constant 0 : i32
    %c0_i32_0 = arith.constant 0 : i32
    %c0_i32_1 = arith.constant 0 : i32
    return %c0_i32, %c0_i32_0 : i32, i32
  }
  func.func @transform_4(%arg0: i32) -> (i32, i32) {
    %c0_i32 = arith.constant 0 : i32
    %c0_i32_0 = arith.constant 0 : i32
    %c0_i32_1 = arith.constant 0 : i32
    return %c0_i32, %c0_i32_0 : i32, i32
  }
  func.func @transform_5(%arg0: i32) -> (i32, i32) {
    %c0_i32 = arith.constant 0 : i32
    %c0_i32_0 = arith.constant 0 : i32
    %c0_i32_1 = arith.constant 0 : i32
    return %c0_i32, %c0_i32_0 : i32, i32
  }
  func.func @transform_6(%arg0: i32) -> (i32, i32) {
    %c0_i32 = arith.constant 0 : i32
    %c0_i32_0 = arith.constant 0 : i32
    %c0_i32_1 = arith.constant 0 : i32
    return %c0_i32, %c0_i32_0 : i32, i32
  }
  func.func @transform_7(%arg0: i32) -> (i32, i32) {
    %c0_i32 = arith.constant 0 : i32
    %c0_i32_0 = arith.constant 0 : i32
    return %arg0, %c0_i32 : i32, i32
  }
}

</mosaic_0001>

<bundles_post_ra>
// kernel: tpu_custom_call.1
= control target key start
LH: loop header
LB: loop body
LE: loop exit
PB: predicated region body
PF: predicated region fallthrough
CT: control target
= control target key end

     0   :  { %v422_v1 = vmov 0.0   ;;  %vm423_vm0 = vmmov 0   ;;  %s531_s0 = inlined_call_operand.vmem [shape: bf16[8,112], index: 0, kind: input, shape index: {}]   ;;  %s532_s1 = inlined_call_operand.vmem [shape: bf16[112,56], index: 1, kind: input, shape index: {}]   ;;  %s533_s2 = inlined_call_operand.vmem [shape: f32[1,56], index: 2, kind: input, shape index: {}]   ;;  %s534_s3 = inlined_call_operand.vmem [shape: bf16[56,28], index: 3, kind: input, shape index: {}]   ;;  %s535_s4 = inlined_call_operand.vmem [shape: f32[1,28], index: 4, kind: input, shape index: {}]   ;;  %s536_s5 = inlined_call_operand.vmem [shape: bf16[28,128], index: 5, kind: input, shape index: {}]   ;;  %s537_s6 = inlined_call_operand.vmem [shape: f32[1,128], index: 6, kind: input, shape index: {}]   ;;  %s538_s7 = inlined_call_operand.hbm [shape: f32[8,128], index: 7, kind: output, shape index: {}]  }
   0x1   :  { %v385_v0 = vld [vmem:[%s532_s1] sm:$0xff]   ;;  %344 = vmatprep.subr.bf16.mxu0 %v422_v1  ;;  %362 = vmatprep.subr.bf16.mxu1 %v422_v1  ;;  %v386_v2 = vld [vmem:[%s532_s1 + $0x8] sm:$0xff]   ;;  %v387_v3 = vld [vmem:[%s532_s1 + $0x10] sm:$0xff]  }
   0x2   :  { %345 = vmatpush3.bf16.msra.mxu0 %v385_v0  ;;  %358 = vmatprep.mubr.msk.bf16.mxu0 %vm423_vm0, %v422_v1  ;;  %v392_v4 = vld [vmem:[%s534_s3] sm:$0xff]   ;;  %v388_v5 = vld [vmem:[%s532_s1 + $0x18] sm:$0xff]   ;;  %v393_v6 = vld [vmem:[%s534_s3 + $0x8] sm:$0xff]  }
   0x3   :  { %346 = vmatprep.subr.bf16.mxu0 %v422_v1  ;;  %370 = vmatprep.mubr.msk.bf16.mxu1 %vm423_vm0, %v422_v1 }
   0x4   :  { %363 = vmatpush3.bf16.msra.mxu1 %v392_v4 }
   0x5   :  { %364 = vmatprep.subr.bf16.mxu1 %v422_v1 }
   0x6   :  { %347 = vmatpush3.bf16.msra.mxu0 %v386_v2 }
   0x7   :  { %348 = vmatprep.subr.bf16.mxu0 %v422_v1 }
   0xa   :  { %349 = vmatpush3.bf16.msra.mxu0 %v387_v3 }
   0xb   :  { %350 = vmatprep.subr.bf16.mxu0 %v422_v1 }
   0xc   :  { %12 = vsyncpa [#allocation3], 0  ;;  %v389_v7 = vld [vmem:[%s532_s1 + $0x20] sm:$0xff]   ;;  %365 = vmatpush3.bf16.msra.mxu1 %v393_v6  ;;  %v390_v8 = vld [vmem:[%s532_s1 + $0x28] sm:$0xff]   ;;  %vm92_vm1 = vcmask 916480   ;;  %vm177_vm2 = vcmask 1043456  }
   0xd   :  { %366 = vmatprep.subr.bf16.mxu1 %v422_v1  ;;  %v391_v9 = vld [vmem:[%s532_s1 + $0x30] sm:$0xff]   ;;  %v28_v10 = vld [vmem:[%s531_s0] sm:$0xf]  ;;  %v395_v12 = vld [vmem:[%s534_s3 + $0x18] ss:$0 sps:$4 sm:$0xff]   ;;  %vm173_vm3 = vcmask 457728  }
   0xe   :  { %351 = vmatpush3.bf16.msra.mxu0 %v388_v5  ;;  %v394_v11 = vld [vmem:[%s534_s3 + $0x10] sm:$0xff]   ;;  %v179_v13 = vsel %vm177_vm2, %v395_v12, 0  ;;  %v309_v14 = vld [vmem:[%s533_s2] ss:$0 sm:$0xff]  ;;  %v397_v23 = vld [vmem:[%s536_s5 + $0x8] sm:$0x3f]  }
   0xf   :  { %352 = vmatprep.subr.bf16.mxu0 %v422_v1  ;;  %v396_v21 = vld [vmem:[%s536_s5] sm:$0xff]   ;;  %vm249_vm4 = vcmask 1045504   ;;  %vm245_vm5 = vcmask 228352   ;;  %s424_s5 = smov [#allocation2]  }
  0x10   :  { %367 = vmatpush3.bf16.msra.mxu1 %v394_v11  ;;  %v251_v24 = vsel %vm249_vm4, %v397_v23, 0  ;;  %v318_v25 = vld [vmem:[%s535_s4] ss:$0 sm:$0xff]  ;;  %s301_s8 = sshll.u32 %s424_s5, 4  ;;  %s302_s8 = int_to_ptr.vmem [resolvable:$true] %s301_s8 }
  0x11   :  { %368 = vmatprep.subr.bf16.mxu1 %v422_v1  ;;  %v324_v33 = vld [vmem:[%s537_s6] ss:$0 sm:$0xff]  ;;  %s398_s4 = scalar_lea.vmem %s302_s8, 128  ;;  %p403_p1 = scmp.lt.s32.totalorder %s302_s8, %s302_s8 }
  0x12   :  { %353 = vmatpush3.bf16.msra.mxu0 %v389_v7  ;;  %p399_p0 = scmp.ne.s32.totalorder %s302_s8, %s398_s4  ;;  %p404_p2 = scmp.lt.s32.totalorder %s398_s4, %s398_s4 }
  0x13   :  { %354 = vmatprep.subr.bf16.mxu0 %v422_v1 }
  0x14   :  { %369 = vmatpush3.bf16.msra.mxu1 %v179_v13  ;;  %p405_p3 = por %p404_p2, %p403_p1 }
  0x15   :  { %374 = vmatprep.subr.bf16.mxu1 %v422_v1 }
  0x16   :  { %355 = vmatpush3.bf16.msra.mxu0 %v390_v8  ;;  %p406_p4 = pnand %p405_p3, %p399_p0 }
  0x17   :  { %356 = vmatprep.subr.bf16.mxu0 %v422_v1 }
  0x1a   :  { %357 = vmatpush3.bf16.msra.mxu0 %v391_v9 }
  0x1d   :  { %359 = vmatmul.mubr.msk.bf16.vlgmr.msra.gmra.mrb[0].mxu0 %vm92_vm1, %v28_v10 }
  0xf0   :  { %v130_v15 = vpop.f32.mrb[0].mxu0 }
  0xf1   :  { %v131_v16 = vadd.f32 %v309_v14, %v130_v15  ;;  %v360_v17 = vpop.f32.mrb[1].mxu0 }
  0xf2   :  { %v133_v18 = vpop.f32.mrb[2].mxu0 }
  0xf3   :  { %v136_v19 = vmax.f32 %v131_v16, 0.0  ;;  %v361_v20 = vpop.f32.mrb[3].mxu0 }
  0xf5   :  { %v137_v22 = vpack.c.bf16 %v136_v19, %v136_v19 }
  0xf7   :  { %371 = vmatmul.mubr.msk.bf16.vlgmr.msra.gmra.mrb[0].mxu1 %vm173_vm3, %v137_v22 }
  0xf8   :  { %375 = vmatpush3.bf16.msra.mxu1 %v396_v21  ;;  %378 = vmatprep.mubr.msk.bf16.mxu1 %vm423_vm0, %v422_v1 }
  0xf9   :  { %376 = vmatprep.subr.bf16.mxu1 %v422_v1 }
  0xfc   :  { %377 = vmatpush3.bf16.msra.mxu1 %v251_v24 }
 0x1ca   :  { %v215_v26 = vpop.f32.mrb[0].mxu1 }
 0x1cb   :  { %v216_v27 = vadd.f32 %v318_v25, %v215_v26  ;;  %v372_v28 = vpop.f32.mrb[1].mxu1 }
 0x1cc   :  { %v218_v29 = vpop.f32.mrb[2].mxu1 }
 0x1cd   :  { %v221_v30 = vmax.f32 %v216_v27, 0.0  ;;  %v373_v31 = vpop.f32.mrb[3].mxu1 }
 0x1cf   :  { %v222_v32 = vpack.c.bf16 %v221_v30, %v221_v30 }
 0x1d1   :  { %379 = vmatmul.mubr.msk.bf16.vlgmr.msra.gmra.mrb[4].mxu1 %vm245_vm5, %v222_v32 }
 0x2a4   :  { %v287_v34 = vpop.f32.mrb[4].mxu1 }
 0x2a5   :  { %v288_v35 = vadd.f32 %v324_v33, %v287_v34  ;;  %v380_v36 = vpop.f32.mrb[5].mxu1 }
 0x2a6   :  { %v290_v37 = vpop.f32.mrb[6].mxu1 }
 0x2a7   :  { %v293_v38 = vmax.f32 %v288_v35, 0.0  ;;  %v381_v39 = vpop.f32.mrb[7].mxu1 }
 0x2a9   :  { %294 = vst [vmem:[#allocation2] sm:$0xff] %v293_v38 }
 0x2aa   :  { %409 = shalt.err (!%p406_p4)
}
 0x2ab   :  { %s410_s6 = scalar_lea.hbm %s538_s7, 128 }
 0x2ac   :  { %p411_p5 = scmp.ne.s32.totalorder %s538_s7, %s410_s6  ;;  %p414_p6 = scmp.lt.u32.totalorder %s410_s6, %s538_s7 }
 0x2ae   :  { %p416_p7 = pnand %p414_p6, %p411_p5 }
 0x2b0   :  { %419 = shalt.err (!%p416_p7)
}
 0x2b1   :  { %304 = dma.vmem_to_hbm [thread:$0]  %s302_s8, 128, %s538_s7, [#allocation3]  }
 0x2b2   :  { %420 = dma.done.wait [#allocation3], 128  }
 0x2b3   :  { %421 = vsyncadd [#allocation3], 4294967168 }
 0x2b4   :  { %308 = vsyncpa [#allocation3], 1 }

</bundles_post_ra>
